<compile_context>
chip_gen: v5e
topology: v5e:2x2
jax: 0.10.0
libtpu: 0.0.40
codegen_flags: <defaults>
</compile_context>

<pallas_src>
import functools
import math

import jax
import jax.numpy as jnp
from jax import lax
from jax.experimental import pallas as pl
from jax.experimental.pallas import tpu as pltpu


# Large finite negative (not -inf): every row keeps a finite max from its own
# diagonal block, so masked entries underflow cleanly to exp(...) == 0.
_NEG_MASK = -1e30


def _self_attention_kernel(gamma_ref,   # SMEM (1, 1) f32
                           x_ref,       # VMEM (C+1, L)  x slab + ones row
                           wqkv_ref,    # VMEM (Cp, C+1) bf16 fused [W | b]
                           mask_ref,    # VMEM (L, L)    f32 additive block mask
                           o_ref,       # VMEM (C, L)
                           *, bt, c, cqp):
    x_aug = x_ref[...]                                    # input dtype
    x_res = x_aug[:c].astype(jnp.float32)                 # residual path in f32

    # Fused q/k/v projection; bias folded in via the trailing ones row of the
    # slab and the trailing bias column of wqkv.  bf16 operands -> native MXU
    # matmul, f32 accumulation.
    proj = jnp.dot(wqkv_ref[...], x_aug.astype(jnp.bfloat16),
                   preferred_element_type=jnp.float32)    # (Cp, L) f32

    q = proj[:cqp].astype(jnp.bfloat16)          # (Cqp, L)  rows >= Cq are zero
    k = proj[cqp:2 * cqp].astype(jnp.bfloat16)   # (Cqp, L)
    v = proj[2 * cqp:].astype(jnp.bfloat16)      # (C,   L)

    # scores[i, j] = sum_c q[c, i] * k[c, j]   (transposed-LHS MXU matmul)
    scores = lax.dot_general(q, k, (((0,), (0,)), ((), ())),
                             preferred_element_type=jnp.float32)   # (L, L)

    if bt > 1:
        # Block-diagonal mask: position i only attends within its own batch.
        scores = scores + mask_ref[...]

    m = jnp.max(scores, axis=-1, keepdims=True)
    e = jnp.exp(scores - m)
    attn = e * pl.reciprocal(jnp.sum(e, axis=-1, keepdims=True), approx=True)

    # out[c, i] = sum_j v[c, j] * attn[i, j]   (transposed-RHS MXU matmul)
    out = lax.dot_general(v, attn.astype(jnp.bfloat16),
                          (((1,), (1,)), ((), ())),
                          preferred_element_type=jnp.float32)      # (C, L)

    o_ref[...] = (gamma_ref[0, 0] * out + x_res).astype(o_ref.dtype)


def _round_up(n, m):
    return -(-n // m) * m


def _pad_rows(a, rows):
    if rows == a.shape[0]:
        return a
    pad = jnp.zeros((rows - a.shape[0],) + a.shape[1:], a.dtype)
    return jnp.concatenate([a, pad], axis=0)


def _pick_batch_tile(batch, width, lanes_target=512):
    """Choose (batch_tile, padded_batch) so each grid step sees a lane-dense
    (multiple-of-128-lane) slab of roughly `lanes_target` lanes."""
    bt0 = 128 // math.gcd(width, 128)   # smallest bt with (bt*width) % 128 == 0
    if bt0 > 2 * batch and bt0 * width > 4 * lanes_target:
        # 128-lane alignment would force excessive batch padding; fall back to
        # a single full-batch slab (full-dim blocks are exempt from the rule).
        return batch, batch
    groups_per_tile = max(1, lanes_target // (bt0 * width))
    bt = bt0 * min(groups_per_tile, max(1, -(-batch // bt0)))
    b_pad = _round_up(batch, bt)
    # Prefer >= 2 grid steps (v7x megacore) when the slab splits cleanly.
    if b_pad // bt == 1 and bt % (2 * bt0) == 0:
        bt //= 2
    return bt, b_pad


def _vmem_limit_bytes(c_aug, cp, c, lanes, itemsize):
    """Derive the scoped-VMEM budget from the actual per-step footprints."""
    slab_in = c_aug * lanes * itemsize
    slab_out = c * lanes * itemsize
    weights = 2 * cp * c_aug * 2                 # bf16 fused weights (x2 bufs)
    proj = cp * lanes * 4
    attn = 5 * lanes * lanes * 4                 # scores/exp/attn temps + mask
    est = 2 * (slab_in + slab_out) + weights + proj + attn + (4 << 20)
    # Clamp to 64 MiB: v7x has only 64 MiB physical VMEM per TensorCore.
    return int(min(max(est, 32 << 20), 64 << 20))


def self_attention(x, wq, bq, wk, bk, wv, bv, gamma, *, lanes_target=512):
    """x: (B, C, W); wq/wk: (C//8, C); wv: (C, C); biases (Cout,) or (Cout, 1);
    gamma: scalar / (1,) / (1, 1).  Returns gamma * attention(x) + x."""
    B, C, W = x.shape
    Cq = wq.shape[0]
    # Pad q/k projection rows to a multiple of 16 so the bf16-era slices of
    # `proj` land on sublane-pack boundaries (padded rows/biases are zero).
    Cqp = max(16, _round_up(Cq, 16))
    Cp = 2 * Cqp + C

    # Fuse the three 1x1-conv projections and fold the biases in as an extra
    # column (matched by a ones row appended to the x slab).
    bq2, bk2, bv2 = (jnp.reshape(b, (-1, 1)) for b in (bq, bk, bv))
    wqkv = jnp.concatenate([_pad_rows(wq, Cqp), _pad_rows(wk, Cqp), wv], axis=0)
    bqkv = jnp.concatenate([_pad_rows(bq2, Cqp), _pad_rows(bk2, Cqp), bv2],
                           axis=0)
    wqkv_aug = jnp.concatenate([wqkv, bqkv], axis=1).astype(jnp.bfloat16)

    Bt, B_pad = _pick_batch_tile(B, W, lanes_target)
    lanes = Bt * W

    # Lane-dense layout: fold the (zero-padded) batch into the last dim and
    # append the ones row that realizes the bias inside the projection matmul.
    if B_pad != B:
        x_padded = jnp.concatenate(
            [x, jnp.zeros((B_pad - B, C, W), x.dtype)], axis=0)
    else:
        x_padded = x
    x_fused = jnp.transpose(x_padded, (1, 0, 2)).reshape(C, B_pad * W)
    x_aug = jnp.concatenate(
        [x_fused, jnp.ones((1, B_pad * W), x.dtype)], axis=0)   # (C+1, B_pad*W)

    # Additive block-diagonal mask, built once on the host; it is fetched into
    # VMEM once (constant index_map) and stays resident across grid steps.
    blk = jnp.arange(lanes, dtype=jnp.int32) // W
    neg_mask = jnp.where(blk[:, None] == blk[None, :],
                         jnp.float32(0.0), jnp.float32(_NEG_MASK))

    gamma_smem = jnp.asarray(gamma, jnp.float32).reshape(1, 1)

    grid = (B_pad // Bt,)
    kernel = functools.partial(_self_attention_kernel, bt=Bt, c=C, cqp=Cqp)

    out_fused = pl.pallas_call(
        kernel,
        out_shape=jax.ShapeDtypeStruct((C, B_pad * W), x.dtype),
        grid_spec=pltpu.PrefetchScalarGridSpec(
            num_scalar_prefetch=0,
            grid=grid,
            in_specs=[
                pl.BlockSpec(memory_space=pltpu.MemorySpace.SMEM),  # gamma
                pl.BlockSpec((C + 1, lanes), lambda g: (0, g)),     # x slab
                pl.BlockSpec((Cp, C + 1), lambda g: (0, 0)),        # fused W|b
                pl.BlockSpec((lanes, lanes), lambda g: (0, 0)),     # block mask
            ],
            out_specs=pl.BlockSpec((C, lanes), lambda g: (0, g)),
        ),
        compiler_params=pltpu.CompilerParams(
            dimension_semantics=("parallel",),
            vmem_limit_bytes=_vmem_limit_bytes(
                C + 1, Cp, C, lanes, jnp.dtype(x.dtype).itemsize)),
    )(gamma_smem, x_aug, wqkv_aug, neg_mask)

    # Undo the wrapper-side layout plumbing and drop batch padding.
    out = out_fused.reshape(C, B_pad, W)[:, :B]
    return jnp.transpose(out, (1, 0, 2))


def self_attention_ref(x, wq, bq, wk, bk, wv, bv, gamma):
    """Pure-JAX reference mirroring the PyTorch forward (f32 throughout)."""
    bq2, bk2, bv2 = (jnp.reshape(b, (-1, 1)) for b in (bq, bk, bv))
    q = jnp.einsum('oc,bcw->bow', wq, x) + bq2[None]     # (B, Cq, W)
    k = jnp.einsum('oc,bcw->bow', wk, x) + bk2[None]     # (B, Cq, W)
    v = jnp.einsum('oc,bcw->bow', wv, x) + bv2[None]     # (B, C,  W)
    attn = jnp.einsum('bci,bcj->bij', q, k)              # (B, W, W)
    attn = jax.nn.softmax(attn, axis=-1)
    out = jnp.einsum('bcj,bij->bci', v, attn)            # (B, C, W)
    return jnp.reshape(gamma, ()) * out + x


if __name__ == "__main__":
    key = jax.random.PRNGKey(0)
    B, C, W = 2, 32, 16            # in_channels=32 -> query/key channels = 4
    Cq = C // 8

    k_x, k_wq, k_bq, k_wk, k_bk, k_wv, k_bv = jax.random.split(key, 7)
    x = jax.random.normal(k_x, (B, C, W), jnp.float32)
    wq = jax.random.normal(k_wq, (Cq, C), jnp.float32) * 0.1
    bq = jax.random.normal(k_bq, (Cq, 1), jnp.float32) * 0.1
    wk = jax.random.normal(k_wk, (Cq, C), jnp.float32) * 0.1
    bk = jax.random.normal(k_bk, (Cq, 1), jnp.float32) * 0.1
    wv = jax.random.normal(k_wv, (C, C), jnp.float32) * 0.1
    bv = jax.random.normal(k_bv, (C, 1), jnp.float32) * 0.1
    # PyTorch inits gamma to 0 (output == x); use a nonzero value here so the
    # attention path is actually exercised.
    gamma = jnp.full((1,), 0.5, jnp.float32)

    out = jax.block_until_ready(
        self_attention(x, wq, bq, wk, bk, wv, bv, gamma))
    ref = self_attention_ref(x, wq, bq, wk, bk, wv, bv, gamma)

    assert out.shape == (B, C, W)
    # Tolerance accounts for bf16 MXU operands (f32 accumulation) and the
    # approximate (EUP) reciprocal in the softmax normalization.
    assert jnp.allclose(out, ref, atol=1e-2, rtol=1e-2), "mismatch vs reference"

    print("KERNEL_OK")
</pallas_src>

<mosaic_0001>
module attributes {stable_mosaic.version = 11 : i64} {
  func.func @_self_attention_kernel(%arg0: i32, %arg1: memref<1x1xf32, #tpu.memory_space<smem>>, %arg2: memref<33x128xf32, #tpu.memory_space<vmem>>, %arg3: memref<64x33xbf16, #tpu.memory_space<vmem>>, %arg4: memref<128x128xf32, #tpu.memory_space<vmem>>, %arg5: memref<32x128xf32, #tpu.memory_space<vmem>>) attributes {dimension_semantics = [#tpu.dimension_semantics<parallel>], iteration_bounds = array<i64: 1>, scalar_prefetch = 0 : i64, scratch_operands = 0 : i64, tpu.core_type = #tpu.core_type<tc>, window_params = [{transform_indices = @transform_0, window_bounds = array<i64: 1, 1>}, {transform_indices = @transform_1, window_bounds = array<i64: 33, 128>}, {pipeline_mode = #tpu.pipeline_mode<synchronous>, transform_indices = @transform_2, window_bounds = array<i64: 64, 33>}, {pipeline_mode = #tpu.pipeline_mode<synchronous>, transform_indices = @transform_3, window_bounds = array<i64: 128, 128>}, {transform_indices = @transform_4, window_bounds = array<i64: 32, 128>}]} {
    %c0 = arith.constant 0 : index
    %c0_0 = arith.constant 0 : index
    %0 = vector.load %arg2[%c0, %c0_0] : memref<33x128xf32, #tpu.memory_space<vmem>>, vector<33x128xf32>
    %1 = vector.extract_strided_slice %0 {offsets = [0, 0], sizes = [32, 128], strides = [1, 1]} : vector<33x128xf32> to vector<32x128xf32>
    %c0_1 = arith.constant 0 : index
    %c0_2 = arith.constant 0 : index
    %2 = vector.load %arg3[%c0_1, %c0_2] : memref<64x33xbf16, #tpu.memory_space<vmem>>, vector<64x33xbf16>
    %3 = arith.truncf %0 : vector<33x128xf32> to vector<33x128xbf16>
    %cst = arith.constant dense<0.000000e+00> : vector<64x128xf32>
    %4 = tpu.matmul %2, %3, %cst {dimension_numbers = #tpu.dot_dimension_numbers<[1], [0], [0], [1], [0, 0, 1, 1], [], []>} : vector<64x33xbf16>, vector<33x128xbf16>, vector<64x128xf32> -> vector<64x128xf32>
    %5 = vector.extract_strided_slice %4 {offsets = [0, 0], sizes = [16, 128], strides = [1, 1]} : vector<64x128xf32> to vector<16x128xf32>
    %6 = arith.truncf %5 : vector<16x128xf32> to vector<16x128xbf16>
    %7 = vector.extract_strided_slice %4 {offsets = [16, 0], sizes = [16, 128], strides = [1, 1]} : vector<64x128xf32> to vector<16x128xf32>
    %8 = arith.truncf %7 : vector<16x128xf32> to vector<16x128xbf16>
    %9 = vector.extract_strided_slice %4 {offsets = [32, 0], sizes = [32, 128], strides = [1, 1]} : vector<64x128xf32> to vector<32x128xf32>
    %10 = arith.truncf %9 : vector<32x128xf32> to vector<32x128xbf16>
    %cst_3 = arith.constant dense<0.000000e+00> : vector<128x128xf32>
    %11 = tpu.matmul %6, %8, %cst_3 {dimension_numbers = #tpu.dot_dimension_numbers<[0], [0], [1], [1], [0, 1, 1, 1], [], []>} : vector<16x128xbf16>, vector<16x128xbf16>, vector<128x128xf32> -> vector<128x128xf32>
    %c0_4 = arith.constant 0 : index
    %c0_5 = arith.constant 0 : index
    %12 = vector.load %arg4[%c0_4, %c0_5] : memref<128x128xf32, #tpu.memory_space<vmem>>, vector<128x128xf32>
    %13 = arith.addf %11, %12 : vector<128x128xf32>
    %cst_6 = arith.constant dense<0xFF800000> : vector<128xf32>
    %14 = vector.multi_reduction <maximumf>, %13, %cst_6 [1] : vector<128x128xf32> to vector<128xf32>
    %15 = vector.shape_cast %14 : vector<128xf32> to vector<128x1xf32>
    %16 = vector.broadcast %15 : vector<128x1xf32> to vector<128x128xf32>
    %17 = arith.subf %13, %16 : vector<128x128xf32>
    %18 = math.exp %17 : vector<128x128xf32>
    %cst_7 = arith.constant dense<0.000000e+00> : vector<128xf32>
    %19 = vector.multi_reduction <add>, %18, %cst_7 [1] : vector<128x128xf32> to vector<128xf32>
    %20 = vector.shape_cast %19 : vector<128xf32> to vector<128x1xf32>
    %21 = tpu.reciprocal %20 {approx = true} : vector<128x1xf32> -> vector<128x1xf32>
    %22 = vector.broadcast %21 : vector<128x1xf32> to vector<128x128xf32>
    %23 = arith.mulf %18, %22 : vector<128x128xf32>
    %24 = arith.truncf %23 : vector<128x128xf32> to vector<128x128xbf16>
    %cst_8 = arith.constant dense<0.000000e+00> : vector<32x128xf32>
    %25 = tpu.matmul %10, %24, %cst_8 {dimension_numbers = #tpu.dot_dimension_numbers<[1], [1], [0], [0], [0, 0, 1, 0], [], []>} : vector<32x128xbf16>, vector<128x128xbf16>, vector<32x128xf32> -> vector<32x128xf32>
    %c0_9 = arith.constant 0 : index
    %c0_10 = arith.constant 0 : index
    %26 = memref.load %arg1[%c0_9, %c0_10] : memref<1x1xf32, #tpu.memory_space<smem>>
    %27 = vector.broadcast %26 : f32 to vector<32x128xf32>
    %28 = arith.mulf %27, %25 : vector<32x128xf32>
    %29 = arith.addf %28, %1 : vector<32x128xf32>
    %c0_11 = arith.constant 0 : index
    %c0_12 = arith.constant 0 : index
    %30 = vector.load %arg5[%c0_11, %c0_12] : memref<32x128xf32, #tpu.memory_space<vmem>>, vector<32x128xf32>
    tpu.vector_store %arg5[%c0_11, %c0_12], %29 {strides = array<i32>} : memref<32x128xf32, #tpu.memory_space<vmem>>, vector<32x128xf32>,
    return
  }
  func.func @transform_0(%arg0: i32) -> (i32, i32) {
    %c0_i32 = arith.constant 0 : i32
    %c0_i32_0 = arith.constant 0 : i32
    %c0_i32_1 = arith.constant 0 : i32
    return %c0_i32, %c0_i32_0 : i32, i32
  }
  func.func @transform_1(%arg0: i32) -> (i32, i32) {
    %c0_i32 = arith.constant 0 : i32
    %c0_i32_0 = arith.constant 0 : i32
    return %c0_i32, %arg0 : i32, i32
  }
  func.func @transform_2(%arg0: i32) -> (i32, i32) {
    %c0_i32 = arith.constant 0 : i32
    %c0_i32_0 = arith.constant 0 : i32
    %c0_i32_1 = arith.constant 0 : i32
    return %c0_i32, %c0_i32_0 : i32, i32
  }
  func.func @transform_3(%arg0: i32) -> (i32, i32) {
    %c0_i32 = arith.constant 0 : i32
    %c0_i32_0 = arith.constant 0 : i32
    %c0_i32_1 = arith.constant 0 : i32
    return %c0_i32, %c0_i32_0 : i32, i32
  }
  func.func @transform_4(%arg0: i32) -> (i32, i32) {
    %c0_i32 = arith.constant 0 : i32
    %c0_i32_0 = arith.constant 0 : i32
    return %c0_i32, %arg0 : i32, i32
  }
}

</mosaic_0001>

<bundles_post_ra>
// kernel: tpu_custom_call.1
= control target key start
LH: loop header
LB: loop body
LE: loop exit
PB: predicated region body
PF: predicated region fallthrough
CT: control target
= control target key end

     0   :  { %10 = vsyncpa [#allocation4], 0  ;;  %s812_s0 = inlined_call_operand.<no memory space> [shape: f32[1,1], index: 0, kind: input, shape index: {}]   ;;  %s813_s1 = inlined_call_operand.vmem [shape: f32[33,128], index: 1, kind: input, shape index: {}]   ;;  %s814_s2 = inlined_call_operand.vmem [shape: bf16[64,33], index: 2, kind: input, shape index: {}]   ;;  %s815_s3 = inlined_call_operand.hbm [shape: f32[128,128], index: 3, kind: input, shape index: {}]   ;;  %s816_s4 = inlined_call_operand.hbm [shape: f32[32,128], index: 4, kind: output, shape index: {}]  }
   0x1   :  { %11 = vsyncpa [#allocation5], 0  ;;  %s22_s17 = sshll.u32 %s815_s3, 4  ;;  %s596_s18 = smov [#allocation3]   ;;  %s23_s17 = int_to_ptr.hbm [resolvable:$true] %s22_s17 }
   0x2   :  { %s24_s19 = sshll.u32 %s596_s18, 4  ;;  %s597_s20 = smov 128   ;;  %s25_s19 = int_to_ptr.vmem [resolvable:$true] %s24_s19 }
   0x3   :  { %s598_s21 = smov 8  }
   0x4   :  { %30 = dma.hbm_to_vmem [thread:$0]  %s23_s17, 2048, %s25_s19, [#allocation4], %s597_s20, %s597_s20, %s598_s21  }
   0x5   :  { %592 = dma.done.wait [#allocation4], 2048  }
   0x6   :  { %593 = vsyncadd [#allocation4], 4294965248  ;;  %vm85_vm0 = vcmask 1040384   ;;  %v40_v0 = vld [vmem:[%s813_s1 + $0x20] sm:$0x1]  ;;  %v599_v1 = vmov 0  }
   0x7   :  { %v87_v2 = vsel %vm85_vm0, 65535, %v599_v1  ;;  %v51_v3 = vpack.c.bf16 %v40_v0, %v40_v0  ;;  %v638_v4 = vld [vmem:[%s813_s1 + $0x10] sm:$0xff]  ;;  %v643_v5 = vld [vmem:[%s813_s1 + $0x18] sm:$0xff]  ;;  %v650_v8 = vld [vmem:[%s813_s1] sm:$0xff]  ;;  %vm72_vm1 = vcmask 269312   ;;  %vm156_vm2 = vcmask 130048  }
   0x8   :  { %v50_v7 = vpack.c.bf16 %v643_v5, %v638_v4  ;;  %v655_v9 = vld [vmem:[%s813_s1 + $0x8] sm:$0xff]  ;;  %v462_v11 = vld [vmem:[%s814_s2] sm:$0xff]  ;;  %v134_v43 = vld [vmem:[#allocation3 + $0x50] sm:$0xff]  ;;  %s600_s13 = smov [#allocation6]  }
   0x9   :  { %v89_v6 = vand.u32 %v87_v2, %v51_v3  ;;  %v49_v10 = vpack.c.bf16 %v655_v9, %v650_v8  ;;  %v463_v12 = vld [vmem:[%s814_s2 + $0x8] sm:$0xff]  ;;  %v136_v35 = vld [vmem:[#allocation3 + $0x60] sm:$0xff]  ;;  %v138_v44 = vld [vmem:[#allocation3 + $0x70] sm:$0xff]  ;;  %s419_s14 = sshll.u32 %s600_s13, 4  ;;  %s420_s14 = int_to_ptr.vmem [resolvable:$true] %s419_s14 }
   0xa   :  { %v137_v39 = vld [vmem:[#allocation3 + $0x68] sm:$0xff]  ;;  %v132_v48 = vld [vmem:[#allocation3 + $0x40] sm:$0xff]  ;;  %v139_v49 = vld [vmem:[#allocation3 + $0x78] sm:$0xff] }
   0xb   :  { %96 = vmatpush.bf16.msra.mxu0 %v89_v6  ;;  %v130_v54 = vld [vmem:[#allocation3 + $0x30] sm:$0xff]  ;;  %v135_v55 = vld [vmem:[#allocation3 + $0x58] sm:$0xff]  ;;  %v128_v58 = vld [vmem:[#allocation3 + $0x20] sm:$0xff] }
   0xc   :  { %v133_v59 = vld [vmem:[#allocation3 + $0x48] sm:$0xff]  ;;  %v126_v63 = vld [vmem:[#allocation3 + $0x10] sm:$0xff]  ;;  %v131_v0 = vld [vmem:[#allocation3 + $0x38] sm:$0xff] }
   0xd   :  { %v124_v3 = vld [vmem:[#allocation3] sm:$0xff]  ;;  %v129_v6 = vld [vmem:[#allocation3 + $0x28] sm:$0xff] }
   0xf   :  { %97 = vmatpush.bf16.msra.mxu0 %v50_v7 }
  0x13   :  { %98 = vmatpush.bf16.msra.mxu0 %v49_v10 }
  0x16   :  { %450 = vmatmul.msk.bf16.vlgmr.msra.gmra.mxu0 %vm72_vm1, %v462_v11  ;;  %v127_v11 = vld [vmem:[#allocation3 + $0x18] sm:$0xff] }
  0x26   :  { %451 = vmatmul.msk.bf16.gmra.mxu0 %vm72_vm1, %v463_v12 }
  0x93   :  { %v100_v13 = vpop.f32.mrf.mxu0 }
  0x9b   :  { %v102_v14 = vpop.f32.mrf.mxu0 }
  0x9c   :  { %v120_v15 = vpack.c.bf16 %v102_v14, %v100_v13  ;;  %v125_v13 = vld [vmem:[#allocation3 + $0x8] sm:$0xff] }
  0x9e   :  { %140 = vxpose.xlu0.c.b16.start.end [1/1] (short) %v120_v15, 128 }
  0xa3   :  { %v105_v16 = vpop.f32.mrf.mxu0 }
  0xab   :  { %v107_v17 = vpop.f32.mrf.mxu0 }
  0xac   :  { %v121_v18 = vpack.c.bf16 %v107_v17, %v105_v16 }
  0xae   :  { %188 = vmatpush.bf16.msra.mxu1 %v121_v18  ;;  %466 = vmatpush.bf16.msra.mxu3 %v121_v18 }
 0x14a   :  { %v148_v19 = vpop.trf.xlu0 }
 0x14b   :  { %454 = vmatmul.msk.bf16.vlgmr.msra.gmra.mxu1 %vm156_vm2, %v148_v19 }
 0x15a   :  { %v149_v20 = vpop.trf.xlu0 }
 0x15b   :  { %455 = vmatmul.msk.bf16.gmra.mxu1 %vm156_vm2, %v149_v20 }
 0x16a   :  { %v150_v21 = vpop.trf.xlu0 }
 0x16b   :  { %456 = vmatmul.msk.bf16.gmra.mxu1 %vm156_vm2, %v150_v21 }
 0x17a   :  { %v151_v22 = vpop.trf.xlu0 }
 0x17b   :  { %457 = vmatmul.msk.bf16.gmra.mxu1 %vm156_vm2, %v151_v22 }
 0x18a   :  { %v152_v23 = vpop.trf.xlu0 }
 0x18b   :  { %458 = vmatmul.msk.bf16.gmra.mxu1 %vm156_vm2, %v152_v23 }
 0x19a   :  { %v153_v24 = vpop.trf.xlu0 }
 0x19b   :  { %459 = vmatmul.msk.bf16.vlgmr.msra.gmra.mxu3 %vm156_vm2, %v153_v24 }
 0x1aa   :  { %v154_v25 = vpop.trf.xlu0 }
 0x1ab   :  { %460 = vmatmul.msk.bf16.gmra.mxu3 %vm156_vm2, %v154_v25 }
 0x1ba   :  { %v155_v26 = vpop.trf.xlu0 }
 0x1bb   :  { %461 = vmatmul.msk.bf16.gmra.mxu3 %vm156_vm2, %v155_v26 }
 0x1c8   :  { %v190_v27 = vpop.f32.mrf.mxu1 }
 0x1c9   :  { %v702_v7 = vadd.f32 %v190_v27, %v124_v3 }
 0x1d0   :  { %v192_v28 = vpop.f32.mrf.mxu1 }
 0x1d1   :  { %v711_v14 = vadd.f32 %v192_v28, %v125_v13 }
 0x1d8   :  { %v195_v29 = vpop.f32.mrf.mxu1 }
 0x1d9   :  { %v696_v1 = vadd.f32 %v195_v29, %v126_v63 }
 0x1e0   :  { %v197_v30 = vpop.f32.mrf.mxu1 }
 0x1e1   :  { %v708_v12 = vadd.f32 %v197_v30, %v127_v11 }
 0x1e8   :  { %v200_v31 = vpop.f32.mrf.mxu1 }
 0x1e9   :  { %v690_v61 = vadd.f32 %v200_v31, %v128_v58 }
 0x1f0   :  { %v202_v34 = vpop.f32.mrf.mxu1 }
 0x1f1   :  { %v704_v10 = vadd.f32 %v202_v34, %v129_v6 }
 0x1f8   :  { %v205_v38 = vpop.f32.mrf.mxu1 }
 0x1f9   :  { %v684_v56 = vadd.f32 %v205_v38, %v130_v54 }
 0x200   :  { %v207_v42 = vpop.f32.mrf.mxu1 }
 0x201   :  { %v698_v2 = vadd.f32 %v207_v42, %v131_v0 }
 0x208   :  { %v210_v50 = vpop.f32.mrf.mxu1 }
 0x209   :  { %v681_v52 = vadd.f32 %v210_v50, %v132_v48 }
 0x210   :  { %v212_v60 = vpop.f32.mrf.mxu1 }
 0x211   :  { %v692_v62 = vadd.f32 %v212_v60, %v133_v59 }
 0x21e   :  { %v215_v32 = vpop.f32.mrf.mxu3 }
 0x21f   :  { %v678_v46 = vadd.f32 %v215_v32, %v134_v43 }
 0x226   :  { %v217_v33 = vpop.f32.mrf.mxu3 }
 0x227   :  { %v686_v57 = vadd.f32 %v217_v33, %v135_v55  ;;  %v464_v33 = vld [vmem:[%s814_s2 + $0x10] sm:$0xff] }
 0x228   :  { %452 = vmatmul.msk.bf16.gmra.mxu0 %vm72_vm1, %v464_v33 }
 0x22e   :  { %v220_v36 = vpop.f32.mrf.mxu3 }
 0x22f   :  { %v221_v37 = vadd.f32 %v220_v36, %v136_v35 }
 0x231   :  { %254 = vmax.xlane.f32.xlu1 %v221_v37 }
 0x236   :  { %v222_v40 = vpop.f32.mrf.mxu3 }
 0x237   :  { %v675_v41 = vadd.f32 %v222_v40, %v137_v39 }
 0x239   :  { %256 = vmax.xlane.f32.xlu2 %v675_v41 }
 0x23e   :  { %v225_v45 = vpop.f32.mrf.mxu3 }
 0x23f   :  { %v226_v47 = vadd.f32 %v225_v45, %v138_v44 }
 0x241   :  { %258 = vmax.xlane.f32.xlu0 %v226_v47  ;;  %250 = vmax.xlane.f32.xlu2 %v678_v46 }
 0x246   :  { %v227_v51 = vpop.f32.mrf.mxu3 }
 0x247   :  { %v228_v53 = vadd.f32 %v227_v51, %v139_v49 }
 0x249   :  { %260 = vmax.xlane.f32.xlu1 %v228_v53  ;;  %246 = vmax.xlane.f32.xlu2 %v681_v52 }
 0x251   :  { %252 = vmax.xlane.f32.xlu1 %v686_v57  ;;  %242 = vmax.xlane.f32.xlu2 %v684_v56 }
 0x259   :  { %248 = vmax.xlane.f32.xlu1 %v692_v62  ;;  %238 = vmax.xlane.f32.xlu2 %v690_v61 }
 0x261   :  { %244 = vmax.xlane.f32.xlu1 %v698_v2  ;;  %234 = vmax.xlane.f32.xlu2 %v696_v1 }
 0x269   :  { %240 = vmax.xlane.f32.xlu1 %v704_v10  ;;  %230 = vmax.xlane.f32.xlu2 %v702_v7 }
 0x271   :  { %236 = vmax.xlane.f32.xlu1 %v708_v12 }
 0x279   :  { %232 = vmax.xlane.f32.xlu1 %v711_v14 }
 0x2a4   :  { %v255_v16 = vpop.xlane.xlu1 %254 }
 0x2a5   :  { %v274_v21 = vsub.f32 %v221_v37, %v255_v16 }
 0x2a7   :  { %v302_v22 = vmul.f32 1.442695, %v274_v21 }
 0x2ac   :  { %v257_v15 = vpop.xlane.xlu2 %256 }
 0x2ad   :  { %v275_v28 = vsub.f32 %v675_v41, %v257_v15 }
 0x2af   :  { %v304_v30 = vmul.f32 1.442695, %v275_v28 }
 0x2b4   :  { %v259_v17 = vpop.xlane.xlu0 %258  ;;  %v251_v18 = vpop.xlane.xlu2 %250 }
 0x2b5   :  { %v276_v19 = vsub.f32 %v226_v47, %v259_v17  ;;  %v272_v29 = vsub.f32 %v678_v46, %v251_v18  ;;  %v465_v47 = vld [vmem:[%s814_s2 + $0x18] sm:$0xff] }
 0x2b6   :  { %453 = vmatmul.msk.bf16.gmra.mxu0 %vm72_vm1, %v465_v47 }
 0x2b7   :  { %v306_v20 = vmul.f32 1.442695, %v276_v19  ;;  %v298_v32 = vmul.f32 1.442695, %v272_v29 }
 0x2b9   :  { %480 = vpow2.f32 %v306_v20 }
 0x2ba   :  { %482 = vpow2.f32 %v302_v22 }
 0x2bc   :  { %v261_v23 = vpop.xlane.xlu1 %260  ;;  %v247_v25 = vpop.xlane.xlu2 %246 }
 0x2bd   :  { %v277_v24 = vsub.f32 %v228_v53, %v261_v23  ;;  %v270_v37 = vsub.f32 %v681_v52, %v247_v25 }
 0x2bf   :  { %v714_v26 = vpop.eup %480  ;;  %v308_v27 = vmul.f32 1.442695, %v277_v24  ;;  %v294_v39 = vmul.f32 1.442695, %v270_v37 }
 0x2c0   :  { %338 = vadd.xlane.f32.xlu2 %v714_v26  ;;  %v722_v34 = vpop.eup %482 }
 0x2c1   :  { %484 = vpow2.f32 %v308_v27 }
 0x2c2   :  { %486 = vpow2.f32 %v304_v30 }
 0x2c3   :  { %488 = vpow2.f32 %v298_v32 }
 0x2c4   :  { %v253_v31 = vpop.xlane.xlu1 %252  ;;  %v243_v36 = vpop.xlane.xlu2 %242  ;;  %490 = vpow2.f32 %v294_v39 }
 0x2c5   :  { %v273_v38 = vsub.f32 %v686_v57, %v253_v31  ;;  %v268_v44 = vsub.f32 %v684_v56, %v243_v36 }
 0x2c7   :  { %v724_v35 = vpop.eup %484  ;;  %v300_v41 = vmul.f32 1.442695, %v273_v38  ;;  %v290_v48 = vmul.f32 1.442695, %v268_v44 }
 0x2c8   :  { %340 = vadd.xlane.f32.xlu1 %v724_v35  ;;  %334 = vadd.xlane.f32.xlu2 %v722_v34  ;;  %v731_v42 = vpop.eup %486 }
 0x2c9   :  { %v733_v43 = vpop.eup %488  ;;  %492 = vpow2.f32 %v300_v41 }
 0x2ca   :  { %v742_v51 = vpop.eup %490  ;;  %494 = vpow2.f32 %v290_v48 }
 0x2cc   :  { %v249_v40 = vpop.xlane.xlu1 %248  ;;  %v239_v46 = vpop.xlane.xlu2 %238 }
 0x2cd   :  { %v271_v45 = vsub.f32 %v692_v62, %v249_v40  ;;  %v266_v53 = vsub.f32 %v690_v61, %v239_v46 }
 0x2cf   :  { %v296_v50 = vmul.f32 1.442695, %v271_v45  ;;  %v744_v52 = vpop.eup %492  ;;  %v286_v56 = vmul.f32 1.442695, %v266_v53 }
 0x2d0   :  { %336 = vadd.xlane.f32.xlu1 %v731_v42  ;;  %330 = vadd.xlane.f32.xlu2 %v733_v43  ;;  %v751_v59 = vpop.eup %494 }
 0x2d1   :  { %496 = vpow2.f32 %v296_v50 }
 0x2d2   :  { %498 = vpow2.f32 %v286_v56  ;;  %v110_v56 = vpop.f32.mrf.mxu0 }
 0x2d4   :  { %v245_v49 = vpop.xlane.xlu1 %244  ;;  %v235_v55 = vpop.xlane.xlu2 %234 }
 0x2d5   :  { %v269_v54 = vsub.f32 %v698_v2, %v245_v49  ;;  %v264_v62 = vsub.f32 %v696_v1, %v235_v55 }
 0x2d7   :  { %v292_v58 = vmul.f32 1.442695, %v269_v54  ;;  %v753_v60 = vpop.eup %496  ;;  %v282_v63 = vmul.f32 1.442695, %v264_v62 }
 0x2d8   :  { %332 = vadd.xlane.f32.xlu1 %v744_v52  ;;  %326 = vadd.xlane.f32.xlu2 %v742_v51  ;;  %v759_v6 = vpop.eup %498 }
 0x2d9   :  { %500 = vpow2.f32 %v292_v58 }
 0x2da   :  { %502 = vpow2.f32 %v282_v63 }
 0x2dc   :  { %v241_v57 = vpop.xlane.xlu1 %240  ;;  %v231_v3 = vpop.xlane.xlu2 %230 }
 0x2dd   :  { %v267_v61 = vsub.f32 %v704_v10, %v241_v57  ;;  %v262_v13 = vsub.f32 %v702_v7, %v231_v3  ;;  %v112_v3 = vpop.f32.mrf.mxu0 }
 0x2df   :  { %v288_v2 = vmul.f32 1.442695, %v267_v61  ;;  %v761_v11 = vpop.eup %500  ;;  %v278_v15 = vmul.f32 1.442695, %v262_v13 }
 0x2e0   :  { %328 = vadd.xlane.f32.xlu1 %v753_v60  ;;  %322 = vadd.xlane.f32.xlu2 %v751_v59  ;;  %v767_v16 = vpop.eup %502 }
 0x2e1   :  { %504 = vpow2.f32 %v288_v2 }
 0x2e2   :  { %506 = vpow2.f32 %v278_v15 }
 0x2e4   :  { %v237_v0 = vpop.xlane.xlu1 %236 }
 0x2e5   :  { %v265_v1 = vsub.f32 %v708_v12, %v237_v0 }
 0x2e7   :  { %v284_v10 = vmul.f32 1.442695, %v265_v1  ;;  %v769_v18 = vpop.eup %504 }
 0x2e8   :  { %324 = vadd.xlane.f32.xlu1 %v761_v11  ;;  %318 = vadd.xlane.f32.xlu2 %v759_v6  ;;  %v774_v20 = vpop.eup %506 }
 0x2e9   :  { %508 = vpow2.f32 %v284_v10 }
 0x2ec   :  { %v233_v17 = vpop.xlane.xlu1 %232 }
 0x2ed   :  { %v263_v7 = vsub.f32 %v711_v14, %v233_v17 }
 0x2ef   :  { %v280_v19 = vmul.f32 1.442695, %v263_v7  ;;  %v776_v21 = vpop.eup %508 }
 0x2f0   :  { %320 = vadd.xlane.f32.xlu1 %v769_v18  ;;  %314 = vadd.xlane.f32.xlu2 %v767_v16 }
 0x2f1   :  { %510 = vpow2.f32 %v280_v19 }
 0x2f7   :  { %v780_v12 = vpop.eup %510 }
 0x2f8   :  { %316 = vadd.xlane.f32.xlu1 %v776_v21  ;;  %310 = vadd.xlane.f32.xlu2 %v774_v20 }
 0x300   :  { %312 = vadd.xlane.f32.xlu1 %v780_v12 }
 0x333   :  { %v339_v22 = vpop.xlane.xlu2 %338  ;;  %v115_v19 = vpop.f32.mrf.mxu0 }
 0x334   :  { %512 = vrcp.f32 %v339_v22 }
 0x33a   :  { %v513_v14 = vpop.eup %512 }
 0x33b   :  { %v341_v23 = vpop.xlane.xlu1 %340  ;;  %v335_v24 = vpop.xlane.xlu2 %334  ;;  %v372_v29 = vmul.f32 %v513_v14, %v714_v26 }
 0x33c   :  { %514 = vrcp.f32 %v341_v23  ;;  %v117_v14 = vpop.f32.mrf.mxu0 }
 0x33d   :  { %516 = vrcp.f32 %v335_v24 }
 0x342   :  { %v515_v25 = vpop.eup %514 }
 0x343   :  { %v337_v27 = vpop.xlane.xlu1 %336  ;;  %v331_v28 = vpop.xlane.xlu2 %330  ;;  %v373_v30 = vmul.f32 %v515_v25, %v724_v35  ;;  %v122_v25 = vpack.c.bf16 %v112_v3, %v110_v56 }
 0x344   :  { %518 = vrcp.f32 %v337_v27  ;;  %v517_v32 = vpop.eup %516  ;;  %v123_v27 = vpack.c.bf16 %v117_v14, %v115_v19 }
 0x345   :  { %v381_v31 = vpack.c.bf16 %v373_v30, %v372_v29  ;;  %520 = vrcp.f32 %v331_v28  ;;  %v370_v38 = vmul.f32 %v517_v32, %v722_v34 }
 0x347   :  { %382 = vmatpush.bf16.xpose.msra.mxu2 %v381_v31  ;;  %467 = vmatpush.bf16.xpose.msrb.mxu3 %v381_v31 }
 0x34a   :  { %v519_v33 = vpop.eup %518 }
 0x34b   :  { %v333_v36 = vpop.xlane.xlu1 %332  ;;  %v327_v37 = vpop.xlane.xlu2 %326  ;;  %v371_v39 = vmul.f32 %v519_v33, %v731_v42 }
 0x34c   :  { %522 = vrcp.f32 %v333_v36  ;;  %v521_v26 = vpop.eup %520 }
 0x34d   :  { %v380_v40 = vpack.c.bf16 %v371_v39, %v370_v38  ;;  %524 = vrcp.f32 %v327_v37  ;;  %v368_v45 = vmul.f32 %v521_v26, %v733_v43 }
 0x34f   :  { %383 = vmatpush.bf16.xpose.msra.mxu2 %v380_v40  ;;  %468 = vmatpush.bf16.xpose.msrb.mxu3 %v380_v40 }
 0x352   :  { %v523_v41 = vpop.eup %522 }
 0x353   :  { %v329_v35 = vpop.xlane.xlu1 %328  ;;  %v323_v44 = vpop.xlane.xlu2 %322  ;;  %v369_v46 = vmul.f32 %v523_v41, %v744_v52 }
 0x354   :  { %526 = vrcp.f32 %v329_v35  ;;  %v525_v34 = vpop.eup %524 }
 0x355   :  { %v379_v47 = vpack.c.bf16 %v369_v46, %v368_v45  ;;  %528 = vrcp.f32 %v323_v44  ;;  %v366_v50 = vmul.f32 %v525_v34, %v742_v51 }
 0x357   :  { %384 = vmatpush.bf16.xpose.msra.mxu2 %v379_v47  ;;  %469 = vmatpush.bf16.xpose.msrb.mxu3 %v379_v47 }
 0x35a   :  { %v527_v48 = vpop.eup %526 }
 0x35b   :  { %v325_v42 = vpop.xlane.xlu1 %324  ;;  %v319_v49 = vpop.xlane.xlu2 %318  ;;  %v367_v53 = vmul.f32 %v527_v48, %v753_v60 }
 0x35c   :  { %530 = vrcp.f32 %v325_v42  ;;  %v529_v43 = vpop.eup %528 }
 0x35d   :  { %v378_v54 = vpack.c.bf16 %v367_v53, %v366_v50  ;;  %532 = vrcp.f32 %v319_v49  ;;  %v364_v57 = vmul.f32 %v529_v43, %v751_v59 }
 0x35f   :  { %385 = vmatpush.bf16.xpose.msra.mxu2 %v378_v54  ;;  %470 = vmatpush.bf16.xpose.msrb.mxu3 %v378_v54 }
 0x362   :  { %v531_v55 = vpop.eup %530 }
 0x363   :  { %v321_v52 = vpop.xlane.xlu1 %320  ;;  %v365_v58 = vmul.f32 %v531_v55, %v761_v11  ;;  %v315_v62 = vpop.xlane.xlu2 %314 }
 0x364   :  { %534 = vrcp.f32 %v321_v52  ;;  %v533_v51 = vpop.eup %532 }
 0x365   :  { %v377_v61 = vpack.c.bf16 %v365_v58, %v364_v57  ;;  %536 = vrcp.f32 %v315_v62  ;;  %v362_v0 = vmul.f32 %v533_v51, %v759_v6 }
 0x367   :  { %386 = vmatpush.bf16.xpose.msra.mxu2 %v377_v61  ;;  %471 = vmatpush.bf16.xpose.msrb.mxu3 %v377_v61 }
 0x36a   :  { %v535_v60 = vpop.eup %534 }
 0x36b   :  { %v317_v63 = vpop.xlane.xlu1 %316  ;;  %v363_v2 = vmul.f32 %v535_v60, %v769_v18  ;;  %v311_v1 = vpop.xlane.xlu2 %310 }
 0x36c   :  { %538 = vrcp.f32 %v317_v63  ;;  %v537_v59 = vpop.eup %536 }
 0x36d   :  { %v376_v13 = vpack.c.bf16 %v363_v2, %v362_v0  ;;  %540 = vrcp.f32 %v311_v1  ;;  %v360_v10 = vmul.f32 %v537_v59, %v767_v16  ;;  %v402_v16 = vstv %s812_s0  ;;  %s421_s0 = sshll.u32 %s816_s4, 4  ;;  %s422_s0 = int_to_ptr.hbm [resolvable:$true] %s421_s0 }
 0x36f   :  { %387 = vmatpush.bf16.xpose.msra.mxu2 %v376_v13  ;;  %472 = vmatpush.bf16.xpose.msrb.mxu3 %v376_v13 }
 0x372   :  { %v539_v11 = vpop.eup %538 }
 0x373   :  { %v313_v15 = vpop.xlane.xlu1 %312  ;;  %v361_v17 = vmul.f32 %v539_v11, %v776_v21  ;;  %v541_v6 = vpop.eup %540 }
 0x374   :  { %542 = vrcp.f32 %v313_v15  ;;  %v358_v22 = vmul.f32 %v541_v6, %v774_v20 }
 0x375   :  { %v375_v7 = vpack.c.bf16 %v361_v17, %v360_v10 }
 0x377   :  { %388 = vmatpush.bf16.xpose.msra.mxu2 %v375_v7  ;;  %473 = vmatpush.bf16.xpose.msrb.mxu3 %v375_v7 }
 0x37a   :  { %v543_v18 = vpop.eup %542 }
 0x37b   :  { %v359_v23 = vmul.f32 %v543_v18, %v780_v12 }
 0x37d   :  { %v374_v24 = vpack.c.bf16 %v359_v23, %v358_v22 }
 0x37f   :  { %389 = vmatpush.bf16.xpose.msra.mxu2 %v374_v24  ;;  %474 = vmatpush.bf16.xpose.msrb.mxu3 %v374_v24 }
 0x386   :  { %390 = vmatmul.bf16.vlgmr.msra.gmra.mxu2 %v122_v25  ;;  %395 = vmatmul.bf16.vlgmr.msrb.gmra.mxu3 %v123_v27 }
 0x409   :  { %v391_v21 = vpop.f32.mrf.mxu2  ;;  %v396_v28 = vpop.f32.mrf.mxu3 }
 0x40a   :  { %v403_v29 = vmul.f32 %v402_v16, %v391_v21  ;;  %v405_v30 = vmul.f32 %v402_v16, %v396_v28 }
 0x40c   :  { %v407_v20 = vadd.f32 %v403_v29, %v650_v8  ;;  %v409_v12 = vadd.f32 %v405_v30, %v638_v4 }
 0x40e   :  { %411 = vst [vmem:[#allocation6] sm:$0xff] %v407_v20 }
 0x40f   :  { %413 = vst [vmem:[#allocation6 + $0x10] sm:$0xff] %v409_v12 }
 0x411   :  { %v393_v31 = vpop.f32.mrf.mxu2  ;;  %v398_v32 = vpop.f32.mrf.mxu3 }
 0x412   :  { %v404_v33 = vmul.f32 %v402_v16, %v393_v31  ;;  %v406_v36 = vmul.f32 %v402_v16, %v398_v32 }
 0x414   :  { %v408_v37 = vadd.f32 %v404_v33, %v655_v9  ;;  %v410_v38 = vadd.f32 %v406_v36, %v643_v5 }
 0x416   :  { %412 = vst [vmem:[#allocation6 + $0x8] sm:$0xff] %v408_v37 }
 0x417   :  { %414 = vst [vmem:[#allocation6 + $0x18] sm:$0xff] %v410_v38 }
 0x418   :  { %427 = dma.vmem_to_hbm [thread:$0]  %s420_s14, 512, %s422_s0, [#allocation5], %s597_s20, %s597_s20, %s598_s21  }
 0x419   :  { %594 = dma.done.wait [#allocation5], 512  }
 0x41a   :  { %595 = vsyncadd [#allocation5], 4294966784 }
 0x41b   :  { %432 = vsyncpa [#allocation4], 1 }
 0x41c   :  { %433 = vsyncpa [#allocation5], 1 }

</bundles_post_ra>
